<compile_context>
chip_gen: v7x
topology: tpu7x:2x2x1
jax: 0.10.0
libtpu: 0.0.40
codegen_flags: <defaults>
</compile_context>

<pallas_src>
import numpy as np
import jax
import jax.numpy as jnp
from jax.experimental import pallas as pl
from jax.experimental.pallas import tpu as pltpu

DIMS = [768, 1024, 128, 64, 16, 1]
D_IN = DIMS[0]
LANE = 128   # lane-padded width for the tiny composed weights (real data in col 0)


# ---------------------------------------------------------------------------
# helpers
# ---------------------------------------------------------------------------
def _round_up(x, m):
    return (x + m - 1) // m * m


def _sublane(dtype):
    # Min second-to-last tile dim: 8 for 4-byte dtypes, 16 for 2-byte (bf16).
    return 32 // np.dtype(dtype).itemsize


def _choose_block(batch, block_b, sublane):
    # Sizing driver: per-step HBM bytes vs ~0.35us fixed step overhead and the
    # scoped-VMEM ceiling -- not the MXU M width.
    if block_b is None:
        block_b = 1024
    block_b = max(sublane, _round_up(block_b, sublane))
    block_b = min(block_b, _round_up(batch, sublane))
    # Keep >= 2 grid steps when the batch allows so ("parallel",) can use both
    # TensorCores on v7x.
    if batch >= 2 * sublane:
        block_b = min(block_b, _round_up(pl.cdiv(batch, 2), sublane))
    return block_b


def _maybe_vmem_limit(est_bytes):
    # v5e's scoped-VMEM default is 16 MiB; only override when we'd get close.
    if est_bytes > 12 * 1024 * 1024:
        return int(min(est_bytes + (4 << 20), 64 << 20))
    return None


def fold_params(params, out_pad=LANE):
    """Compose consecutive Linear layers (eval-mode Dropout = identity) into one
    affine map.  Host-side float64 composition for closer parity with the
    sequential f32 chain.  Returns (W[in, out_pad] bf16, b[1, out_pad] f32)."""
    w_acc = np.asarray(params[0][0], dtype=np.float64)
    b_acc = np.asarray(params[0][1], dtype=np.float64)
    for (w, b) in params[1:]:
        w64 = np.asarray(w, dtype=np.float64)
        w_acc = w_acc @ w64
        b_acc = b_acc @ w64 + np.asarray(b, dtype=np.float64)
    pad = out_pad - w_acc.shape[1]
    w_acc = np.pad(w_acc, ((0, 0), (0, pad)))
    b_acc = np.pad(b_acc, ((0, 0), (0, pad)))
    return jnp.asarray(w_acc, dtype=jnp.bfloat16), jnp.asarray(b_acc, dtype=jnp.float32)


# ---------------------------------------------------------------------------
# kernels
# ---------------------------------------------------------------------------
def affine_kernel(x_ref, w_ref, b_ref, o_ref):
    # bf16 operands into the MXU, f32 accumulation, f32 bias; width-1 store.
    h = jnp.dot(x_ref[...].astype(jnp.bfloat16), w_ref[...],
                preferred_element_type=jnp.float32) + b_ref[...]
    o_ref[...] = h[:, :1].astype(o_ref.dtype)


def two_matmul_kernel(x_ref, w1_ref, b1_ref, w25_ref, b25_ref, o_ref):
    h = jnp.dot(x_ref[...].astype(jnp.bfloat16), w1_ref[...],
                preferred_element_type=jnp.float32) + b1_ref[...]
    # Dropout(0.2 / 0.2 / 0.1) = identity in eval mode.  Cast once right after the
    # bias add to halve the [block_b, 1024] intermediate traffic (v5e store slot).
    h = jnp.dot(h.astype(jnp.bfloat16), w25_ref[...],
                preferred_element_type=jnp.float32) + b25_ref[...]
    o_ref[...] = h[:, :1].astype(o_ref.dtype)


# ---------------------------------------------------------------------------
# forward wrappers
# ---------------------------------------------------------------------------
def mlp_forward_affine(embed, w_full, b_full, *, block_b=None):
    """embed: [B, 768] (f32 or bf16).  (w_full, b_full) from fold_params.  -> [B, 1] f32."""
    batch, d = embed.shape
    assert d == D_IN
    assert w_full.shape == (D_IN, LANE) and b_full.shape == (1, LANE)
    sub = _sublane(embed.dtype)
    block_b = _choose_block(batch, block_b, sub)
    grid = pl.cdiv(batch, block_b)
    xb = embed.dtype.itemsize

    flops = 2 * batch * D_IN * LANE
    bytes_accessed = batch * D_IN * xb + w_full.size * 2 + b_full.size * 4 + batch * 4
    est_vmem = (2 * block_b * D_IN * xb                    # x (double-buffered)
                + 2 * (w_full.size * 2 + b_full.size * 4)  # resident weights
                + 2 * block_b * 4                          # out
                + block_b * LANE * 4)                      # matmul result scratch

    grid_spec = pltpu.PrefetchScalarGridSpec(
        num_scalar_prefetch=0,
        grid=(grid,),
        in_specs=[
            pl.BlockSpec((block_b, D_IN), lambda i: (i, 0)),
            # Constant index_map -> resident in VMEM across all grid steps.
            pl.BlockSpec((D_IN, LANE), lambda i: (0, 0)),
            pl.BlockSpec((1, LANE), lambda i: (0, 0)),
        ],
        out_specs=pl.BlockSpec((block_b, 1), lambda i: (i, 0)),
    )
    return pl.pallas_call(
        affine_kernel,
        out_shape=jax.ShapeDtypeStruct((batch, 1), jnp.float32),
        grid_spec=grid_spec,
        cost_estimate=pl.CostEstimate(flops=int(flops), transcendentals=0,
                                      bytes_accessed=int(bytes_accessed)),
        compiler_params=pltpu.CompilerParams(
            dimension_semantics=("parallel",),
            vmem_limit_bytes=_maybe_vmem_limit(est_vmem)),
    )(embed, w_full, b_full)


def mlp_forward_layered(embed, params, *, block_b=None):
    """embed: [B, 768] (f32 or bf16).  params: [(W[in,out] f32, b[1,out] f32)]*5.  -> [B, 1] f32."""
    batch, d = embed.shape
    assert d == D_IN
    sub = _sublane(embed.dtype)
    block_b = _choose_block(batch, block_b, sub)
    grid = pl.cdiv(batch, block_b)
    xb = embed.dtype.itemsize

    w1 = jnp.asarray(params[0][0], dtype=jnp.bfloat16)   # [768, 1024]
    b1 = jnp.asarray(params[0][1], dtype=jnp.float32)    # [1, 1024]
    w25, b25 = fold_params(params[1:])                   # [1024, 128] bf16, [1, 128] f32

    h1 = DIMS[1]
    flops = 2 * batch * (D_IN * h1 + h1 * LANE)
    wbytes = w1.size * 2 + b1.size * 4 + w25.size * 2 + b25.size * 4
    bytes_accessed = batch * D_IN * xb + wbytes + batch * 4
    est_vmem = (2 * block_b * D_IN * xb
                + 2 * wbytes
                + 2 * block_b * 4
                + block_b * h1 * 6          # f32 + bf16 intermediate scratch
                + block_b * LANE * 4)

    grid_spec = pltpu.PrefetchScalarGridSpec(
        num_scalar_prefetch=0,
        grid=(grid,),
        in_specs=[
            pl.BlockSpec((block_b, D_IN), lambda i: (i, 0)),
            # Constant index_maps -> weights/biases resident across grid steps.
            pl.BlockSpec((D_IN, h1), lambda i: (0, 0)),
            pl.BlockSpec((1, h1), lambda i: (0, 0)),
            pl.BlockSpec((h1, LANE), lambda i: (0, 0)),
            pl.BlockSpec((1, LANE), lambda i: (0, 0)),
        ],
        out_specs=pl.BlockSpec((block_b, 1), lambda i: (i, 0)),
    )
    return pl.pallas_call(
        two_matmul_kernel,
        out_shape=jax.ShapeDtypeStruct((batch, 1), jnp.float32),
        grid_spec=grid_spec,
        cost_estimate=pl.CostEstimate(flops=int(flops), transcendentals=0,
                                      bytes_accessed=int(bytes_accessed)),
        compiler_params=pltpu.CompilerParams(
            dimension_semantics=("parallel",),
            vmem_limit_bytes=_maybe_vmem_limit(est_vmem)),
    )(embed, w1, b1, w25, b25)


# ---------------------------------------------------------------------------
# params / references
# ---------------------------------------------------------------------------
def init_params(key):
    """PyTorch-Linear-style init; stored transposed as W[in,out], b[1,out]."""
    params = []
    for fan_in, fan_out in zip(DIMS[:-1], DIMS[1:]):
        key, kw, kb = jax.random.split(key, 3)
        bound = 1.0 / float(np.sqrt(fan_in))
        w = jax.random.uniform(kw, (fan_in, fan_out), jnp.float32, -bound, bound)
        b = jax.random.uniform(kb, (1, fan_out), jnp.float32, -bound, bound)
        params.append((w, b))
    return params


def reference_exact(embed, params):
    h = embed.astype(jnp.float32)
    for (w, b) in params:
        h = jnp.dot(h, w, precision=jax.lax.Precision.HIGHEST) + b
    return h


def reference_affine(embed, w_full, b_full):
    h = jnp.dot(embed.astype(jnp.bfloat16), w_full,
                preferred_element_type=jnp.float32) + b_full
    return h[:, :1]


def reference_layered(embed, params):
    w1 = params[0][0].astype(jnp.bfloat16)
    b1 = params[0][1].astype(jnp.float32)
    w25, b25 = fold_params(params[1:])
    h = jnp.dot(embed.astype(jnp.bfloat16), w1, preferred_element_type=jnp.float32) + b1
    h = jnp.dot(h.astype(jnp.bfloat16), w25, preferred_element_type=jnp.float32) + b25
    return h[:, :1]


# ---------------------------------------------------------------------------
# demo / self-test
# ---------------------------------------------------------------------------
if __name__ == "__main__":
    root = jax.random.PRNGKey(0)
    kp, kx1, kx2 = jax.random.split(root, 3)
    params = init_params(kp)
    w_full, b_full = fold_params(params)

    def check(name, out, exact, mirrored):
        assert out.shape == exact.shape, (name, out.shape, exact.shape)
        assert bool(jnp.all(jnp.isfinite(out))), name
        # vs. an XLA op chain mirroring the kernel's bf16/f32 arithmetic (tight):
        assert jnp.allclose(out, mirrored, atol=2e-3, rtol=2e-3), (name, out, mirrored)
        # vs. the exact sequential f32 chain (loose, bf16 quantization):
        assert jnp.allclose(out, exact, atol=2e-2, rtol=1e-1), (name, out, exact)

    # --- bf16 embeddings (recommended upstream storage), single grid step ---
    B1 = 16
    x1 = jax.random.normal(kx1, (B1, D_IN), jnp.float32).astype(jnp.bfloat16)
    ref1 = reference_exact(x1, params)
    out1_fast = jax.block_until_ready(mlp_forward_affine(x1, w_full, b_full))
    out1_two = jax.block_until_ready(mlp_forward_layered(x1, params))
    check("fast/bf16", out1_fast, ref1, reference_affine(x1, w_full, b_full))
    check("layered/bf16", out1_two, ref1, reference_layered(x1, params))

    # --- f32 embeddings, ragged batch -> multi-step grid, no wrapper-side pad ---
    B2 = 44
    x2 = jax.random.normal(kx2, (B2, D_IN), jnp.float32)
    ref2 = reference_exact(x2, params)
    out2_fast = jax.block_until_ready(mlp_forward_affine(x2, w_full, b_full))
    out2_two = jax.block_until_ready(mlp_forward_layered(x2, params))
    check("fast/f32-ragged", out2_fast, ref2, reference_affine(x2, w_full, b_full))
    check("layered/f32-ragged", out2_two, ref2, reference_layered(x2, params))

    print("KERNEL_OK")
</pallas_src>

<mosaic_0001>
module attributes {stable_mosaic.version = 11 : i64} {
  func.func @affine_kernel(%arg0: i32, %arg1: memref<16x768xbf16, #tpu.memory_space<vmem>>, %arg2: memref<768x128xbf16, #tpu.memory_space<vmem>>, %arg3: memref<1x128xf32, #tpu.memory_space<vmem>>, %arg4: memref<16x1xf32, #tpu.memory_space<vmem>>) attributes {dimension_semantics = [#tpu.dimension_semantics<parallel>], iteration_bounds = array<i64: 1>, scalar_prefetch = 0 : i64, scratch_operands = 0 : i64, tpu.core_type = #tpu.core_type<tc>, window_params = [{transform_indices = @transform_0, window_bounds = array<i64: 16, 768>}, {pipeline_mode = #tpu.pipeline_mode<synchronous>, transform_indices = @transform_1, window_bounds = array<i64: 768, 128>}, {pipeline_mode = #tpu.pipeline_mode<synchronous>, transform_indices = @transform_2, window_bounds = array<i64: 1, 128>}, {transform_indices = @transform_3, window_bounds = array<i64: 16, 1>}]} {
    %c0 = arith.constant 0 : index
    %c0_0 = arith.constant 0 : index
    %0 = vector.load %arg1[%c0, %c0_0] : memref<16x768xbf16, #tpu.memory_space<vmem>>, vector<16x768xbf16>
    %c0_1 = arith.constant 0 : index
    %c0_2 = arith.constant 0 : index
    %1 = vector.load %arg2[%c0_1, %c0_2] : memref<768x128xbf16, #tpu.memory_space<vmem>>, vector<768x128xbf16>
    %cst = arith.constant dense<0.000000e+00> : vector<16x128xf32>
    %2 = tpu.matmul %0, %1, %cst {dimension_numbers = #tpu.dot_dimension_numbers<[1], [0], [0], [1], [0, 0, 1, 1], [], []>} : vector<16x768xbf16>, vector<768x128xbf16>, vector<16x128xf32> -> vector<16x128xf32>
    %c0_3 = arith.constant 0 : index
    %c0_4 = arith.constant 0 : index
    %3 = vector.load %arg3[%c0_3, %c0_4] : memref<1x128xf32, #tpu.memory_space<vmem>>, vector<1x128xf32>
    %4 = vector.broadcast %3 : vector<1x128xf32> to vector<16x128xf32>
    %5 = arith.addf %2, %4 : vector<16x128xf32>
    %6 = vector.extract_strided_slice %5 {offsets = [0, 0], sizes = [16, 1], strides = [1, 1]} : vector<16x128xf32> to vector<16x1xf32>
    %c0_5 = arith.constant 0 : index
    %c0_6 = arith.constant 0 : index
    %7 = vector.load %arg4[%c0_5, %c0_6] : memref<16x1xf32, #tpu.memory_space<vmem>>, vector<16x1xf32>
    tpu.vector_store %arg4[%c0_5, %c0_6], %6 {strides = array<i32>} : memref<16x1xf32, #tpu.memory_space<vmem>>, vector<16x1xf32>,
    return
  }
  func.func @transform_0(%arg0: i32) -> (i32, i32) {
    %c0_i32 = arith.constant 0 : i32
    %c0_i32_0 = arith.constant 0 : i32
    return %arg0, %c0_i32 : i32, i32
  }
  func.func @transform_1(%arg0: i32) -> (i32, i32) {
    %c0_i32 = arith.constant 0 : i32
    %c0_i32_0 = arith.constant 0 : i32
    %c0_i32_1 = arith.constant 0 : i32
    return %c0_i32, %c0_i32_0 : i32, i32
  }
  func.func @transform_2(%arg0: i32) -> (i32, i32) {
    %c0_i32 = arith.constant 0 : i32
    %c0_i32_0 = arith.constant 0 : i32
    %c0_i32_1 = arith.constant 0 : i32
    return %c0_i32, %c0_i32_0 : i32, i32
  }
  func.func @transform_3(%arg0: i32) -> (i32, i32) {
    %c0_i32 = arith.constant 0 : i32
    %c0_i32_0 = arith.constant 0 : i32
    return %arg0, %c0_i32 : i32, i32
  }
}

</mosaic_0001>

<bundles_post_ra>
// kernel: tpu_custom_call.1
= control target key start
LH: loop header
LB: loop body
LE: loop exit
PB: predicated region body
PF: predicated region fallthrough
CT: control target
= control target key end

     0   :  { %8 = vsyncpa [#allocation3], 0  ;;  %s893_s0 = inlined_call_operand.hbm [shape: bf16[16,768], index: 0, kind: input, shape index: {}]   ;;  %s894_s1 = inlined_call_operand.hbm [shape: bf16[768,128], index: 1, kind: input, shape index: {}]   ;;  %s895_s2 = inlined_call_operand.vmem [shape: f32[1,128], index: 2, kind: input, shape index: {}]   ;;  %s896_s3 = inlined_call_operand.vmem [shape: f32[16,1], index: 3, kind: output, shape index: {}]  }
   0x1   :  { %9 = vsyncpa [#allocation5], 0  ;;  %s834_s12 = smov [#allocation2]   ;;  %s786_s16 = scalar_lea.hbm %s893_s0, 768 }
   0x2   :  { %s15_s13 = sshll.u32 %s834_s12, 4  ;;  %p787_p0 = scmp.ne.s32.totalorder %s893_s0, %s786_s16  ;;  %s16_s13 = int_to_ptr.vmem [resolvable:$true] %s15_s13 }
   0x3   :  { %p790_p1 = scmp.lt.u32.totalorder %s786_s16, %s893_s0 }
   0x5   :  { %p792_p2 = pnand %p790_p1, %p787_p0 }
   0x7   :  { %795 = shalt.err (!%p792_p2)
}
   0x8   :  { %s796_s21 = scalar_lea.vmem %s16_s13, 768  ;;  %p801_p4 = scmp.lt.s32.totalorder %s16_s13, %s16_s13 }
   0x9   :  { %p797_p3 = scmp.ne.s32.totalorder %s16_s13, %s796_s21  ;;  %p802_p5 = scmp.lt.s32.totalorder %s796_s21, %s796_s21 }
   0xb   :  { %p803_p6 = por %p802_p5, %p801_p4 }
   0xd   :  { %p804_p7 = pnand %p803_p6, %p797_p3 }
   0xf   :  { %807 = shalt.err (!%p804_p7)
}
  0x10   :  { %s835_s22 = smov 384   ;;  %s836_s23 = smov 24  }
  0x11   :  { %21 = dma.hbm_to_vmem [thread:$0]  %s893_s0, 768, %s16_s13, [#allocation3], %s835_s22, %s835_s22, %s836_s23  }
  0x12   :  { %s837_s26 = smov [#allocation4]   ;;  %s808_s30 = scalar_lea.hbm %s894_s1, 6144 }
  0x13   :  { %s27_s27 = sshll.u32 %s837_s26, 4  ;;  %p809_p8 = scmp.ne.s32.totalorder %s894_s1, %s808_s30  ;;  %s28_s27 = int_to_ptr.vmem [resolvable:$true] %s27_s27 }
  0x14   :  { %p812_p9 = scmp.lt.u32.totalorder %s808_s30, %s894_s1 }
  0x16   :  { %p814_p10 = pnand %p812_p9, %p809_p8 }
  0x18   :  { %817 = shalt.err (!%p814_p10)
}
  0x19   :  { %s818_s8 = scalar_lea.vmem %s28_s27, 6144  ;;  %p823_p12 = scmp.lt.s32.totalorder %s28_s27, %s28_s27 }
  0x1a   :  { %p819_p11 = scmp.ne.s32.totalorder %s28_s27, %s818_s8  ;;  %p824_p13 = scmp.lt.s32.totalorder %s818_s8, %s818_s8 }
  0x1c   :  { %p825_p0 = por %p824_p13, %p823_p12 }
  0x1e   :  { %p826_p1 = pnand %p825_p0, %p819_p11 }
  0x20   :  { %829 = shalt.err (!%p826_p1)
}
  0x21   :  { %s838_s0 = smov 64   ;;  %s839_s9 = smov 4  }
  0x22   :  { %33 = dma.hbm_to_vmem [thread:$0]  %s894_s1, 6144, %s28_s27, [#allocation5], %s838_s0, %s838_s0, %s839_s9  }
  0x23   :  { %830 = dma.done.wait [#allocation3], 768  }
  0x24   :  { %831 = vsyncadd [#allocation3], 4294966528 }
  0x25   :  { %832 = dma.done.wait [#allocation5], 6144  }
  0x26   :  { %833 = vsyncadd [#allocation5], 4294961152  ;;  %v729_v0 = vld [vmem:[#allocation4 + $0x40] sm:$0xff]   ;;  %v733_v4 = vld [vmem:[#allocation4 + $0x48] sm:$0xff]   ;;  %vm593_vm0 = vcmask 7168  }
  0x27   :  { %v730_v1 = vld [vmem:[#allocation4] sm:$0xff]   ;;  %657 = vmatprep.subr.bf16.mxu0 %v729_v0  ;;  %v734_v5 = vld [vmem:[#allocation4 + $0x8] sm:$0xff]   ;;  %v737_v8 = vld [vmem:[#allocation4 + $0x50] sm:$0xff]  }
  0x28   :  { %v731_v2 = vld [vmem:[#allocation4 + $0xc0] sm:$0xff]   ;;  %658 = vmatpush3.bf16.msra.mxu0 %v730_v1  ;;  %v735_v6 = vld [vmem:[#allocation4 + $0xc8] sm:$0xff]   ;;  %v738_v9 = vld [vmem:[#allocation4 + $0x10] sm:$0xff]  }
  0x29   :  { %v732_v3 = vld [vmem:[#allocation4 + $0x80] sm:$0xff]   ;;  %679 = vmatprep.subr.bf16.mxu1 %v731_v2  ;;  %659 = vmatprep.subr.bf16.mxu0 %v733_v4  ;;  %v736_v7 = vld [vmem:[#allocation4 + $0x88] sm:$0xff]   ;;  %v739_v10 = vld [vmem:[#allocation4 + $0xd0] sm:$0xff]  }
  0x2a   :  { %680 = vmatpush3.bf16.msra.mxu1 %v732_v3  ;;  %v740_v11 = vld [vmem:[#allocation4 + $0x90] sm:$0xff]   ;;  %v741_v12 = vld [vmem:[#allocation4 + $0x58] sm:$0xff]   ;;  %v745_v16 = vld [vmem:[#allocation4 + $0x60] sm:$0xff]  }
  0x2b   :  { %681 = vmatprep.subr.bf16.mxu1 %v735_v6  ;;  %v742_v13 = vld [vmem:[#allocation4 + $0x18] sm:$0xff]   ;;  %v746_v17 = vld [vmem:[#allocation4 + $0x20] sm:$0xff]   ;;  %v749_v20 = vld [vmem:[#allocation4 + $0x68] sm:$0xff]  }
  0x2c   :  { %660 = vmatpush3.bf16.msra.mxu0 %v734_v5  ;;  %v743_v14 = vld [vmem:[#allocation4 + $0xd8] sm:$0xff]   ;;  %v747_v18 = vld [vmem:[#allocation4 + $0xe0] sm:$0xff]   ;;  %v750_v21 = vld [vmem:[#allocation4 + $0x28] sm:$0xff]  }
  0x2d   :  { %661 = vmatprep.subr.bf16.mxu0 %v737_v8  ;;  %v744_v15 = vld [vmem:[#allocation4 + $0x98] sm:$0xff]   ;;  %v748_v19 = vld [vmem:[#allocation4 + $0xa0] sm:$0xff]   ;;  %v751_v22 = vld [vmem:[#allocation4 + $0xe8] sm:$0xff]  }
  0x2e   :  { %682 = vmatpush3.bf16.msra.mxu1 %v736_v7  ;;  %v752_v23 = vld [vmem:[#allocation4 + $0xa8] sm:$0xff]   ;;  %v753_v24 = vld [vmem:[#allocation4 + $0x70] sm:$0xff]   ;;  %v757_v28 = vld [vmem:[#allocation4 + $0x78] sm:$0xff]  }
  0x2f   :  { %683 = vmatprep.subr.bf16.mxu1 %v739_v10  ;;  %v754_v25 = vld [vmem:[#allocation4 + $0x30] sm:$0xff]   ;;  %v758_v29 = vld [vmem:[#allocation4 + $0x38] sm:$0xff]   ;;  %v764_v34 = vld [vmem:[#allocation4 + $0x140] sm:$0xff]  }
  0x30   :  { %662 = vmatpush3.bf16.msra.mxu0 %v738_v9  ;;  %v755_v26 = vld [vmem:[#allocation4 + $0xf0] sm:$0xff]   ;;  %v759_v30 = vld [vmem:[#allocation4 + $0xf8] sm:$0xff]   ;;  %v768_v37 = vld [vmem:[#allocation4 + $0x100] sm:$0xff]  }
  0x31   :  { %663 = vmatprep.subr.bf16.mxu0 %v741_v12  ;;  %v756_v27 = vld [vmem:[#allocation4 + $0xb0] sm:$0xff]   ;;  %v763_v33 = vld [vmem:[#allocation4 + $0xb8] sm:$0xff]   ;;  %v769_v38 = vld [vmem:[#allocation4 + $0x148] sm:$0xff]  }
  0x32   :  { %684 = vmatpush3.bf16.msra.mxu1 %v740_v11  ;;  %v760_v31 = vld [vmem:[#allocation2] ss:$24 sps:$4 sm:$0xff]   ;;  %v762_v32 = vld [vmem:[#allocation2 + $0x4] ss:$24 sps:$4 sm:$0xff]   ;;  %v773_v42 = vld [vmem:[#allocation4 + $0x158] sm:$0xff]  }
  0x33   :  { %685 = vmatprep.subr.bf16.mxu1 %v743_v14  ;;  %502 = vmatprep.mubr.bf16.mxu0 %v762_v32  ;;  %v765_v35 = vld [vmem:[#allocation2 + $0x8] ss:$24 sps:$4 sm:$0xff]   ;;  %v767_v36 = vld [vmem:[#allocation2 + $0xc] ss:$24 sps:$4 sm:$0xff]   ;;  %v770_v39 = vld [vmem:[#allocation4 + $0x108] sm:$0xff]  }
  0x34   :  { %664 = vmatpush3.bf16.msra.mxu0 %v742_v13  ;;  %543 = vmatprep.mubr.bf16.mxu1 %v767_v36  ;;  %v771_v40 = vld [vmem:[#allocation4 + $0x150] sm:$0xff]   ;;  %v774_v43 = vld [vmem:[#allocation4 + $0x118] sm:$0xff]   ;;  %v775_v44 = vld [vmem:[#allocation4 + $0x160] sm:$0xff]  }
  0x35   :  { %665 = vmatprep.subr.bf16.mxu0 %v745_v16  ;;  %v772_v41 = vld [vmem:[#allocation4 + $0x110] sm:$0xff]   ;;  %v776_v45 = vld [vmem:[#allocation4 + $0x120] sm:$0xff]   ;;  %v777_v46 = vld [vmem:[#allocation4 + $0x168] sm:$0xff]  }
  0x36   :  { %686 = vmatpush3.bf16.msra.mxu1 %v744_v15  ;;  %v785_v47 = vld [vmem:[#allocation2 + $0x14] ss:$24 sps:$4 sm:$0xff]   ;;  %v778_v48 = vld [vmem:[#allocation4 + $0x128] sm:$0xff]   ;;  %v779_v49 = vld [vmem:[#allocation4 + $0x170] sm:$0xff]  }
  0x37   :  { %687 = vmatprep.subr.bf16.mxu1 %v747_v18  ;;  %v780_v50 = vld [vmem:[#allocation4 + $0x130] sm:$0xff]   ;;  %v781_v51 = vld [vmem:[#allocation4 + $0x178] sm:$0xff]   ;;  %v602_v55 = vld [vmem:[%s895_s2] ss:$0 sm:$0xff] }
  0x38   :  { %666 = vmatpush3.bf16.msra.mxu0 %v746_v17  ;;  %v782_v52 = vld [vmem:[#allocation4 + $0x138] sm:$0xff]  }
  0x39   :  { %667 = vmatprep.subr.bf16.mxu0 %v749_v20  ;;  %v783_v53 = vld [vmem:[#allocation2 + $0x10] ss:$24 sps:$4 sm:$0xff]  }
  0x3a   :  { %688 = vmatpush3.bf16.msra.mxu1 %v748_v19 }
  0x3b   :  { %689 = vmatprep.subr.bf16.mxu1 %v751_v22 }
  0x3c   :  { %668 = vmatpush3.bf16.msra.mxu0 %v750_v21 }
  0x3d   :  { %669 = vmatprep.subr.bf16.mxu0 %v753_v24 }
  0x3e   :  { %690 = vmatpush3.bf16.msra.mxu1 %v752_v23 }
  0x3f   :  { %691 = vmatprep.subr.bf16.mxu1 %v755_v26 }
  0x40   :  { %670 = vmatpush3.bf16.msra.mxu0 %v754_v25 }
  0x41   :  { %671 = vmatprep.subr.bf16.mxu0 %v757_v28 }
  0x42   :  { %692 = vmatpush3.bf16.msra.mxu1 %v756_v27 }
  0x43   :  { %693 = vmatprep.subr.bf16.mxu1 %v759_v30 }
  0x44   :  { %672 = vmatpush3.bf16.msra.mxu0 %v758_v29 }
  0x45   :  { %701 = vmatprep.subr.bf16.mxu0 %v764_v34 }
  0x46   :  { %694 = vmatpush3.bf16.msra.mxu1 %v763_v33 }
  0x47   :  { %503 = vmatmul.mubr.bf16.vlgmr.msra.gmra.mrb[0].mxu0 %v760_v31 }
  0x48   :  { %702 = vmatpush3.bf16.msra.mxu0 %v768_v37  ;;  %584 = vmatprep.mubr.bf16.mxu0 %v785_v47 }
  0x49   :  { %544 = vmatmul.mubr.bf16.vlgmr.msra.gmra.mrb[0].mxu1 %v765_v35  ;;  %703 = vmatprep.subr.bf16.mxu0 %v769_v38 }
  0x4c   :  { %704 = vmatpush3.bf16.msra.mxu0 %v770_v39 }
  0x4d   :  { %705 = vmatprep.subr.bf16.mxu0 %v771_v40 }
  0x50   :  { %706 = vmatpush3.bf16.msra.mxu0 %v772_v41 }
  0x51   :  { %707 = vmatprep.subr.bf16.mxu0 %v773_v42 }
  0x54   :  { %708 = vmatpush3.bf16.msra.mxu0 %v774_v43 }
  0x55   :  { %709 = vmatprep.subr.bf16.mxu0 %v775_v44 }
  0x58   :  { %710 = vmatpush3.bf16.msra.mxu0 %v776_v45 }
  0x59   :  { %711 = vmatprep.subr.bf16.mxu0 %v777_v46 }
  0x5c   :  { %712 = vmatpush3.bf16.msra.mxu0 %v778_v48 }
  0x5d   :  { %713 = vmatprep.subr.bf16.mxu0 %v779_v49 }
  0x60   :  { %714 = vmatpush3.bf16.msra.mxu0 %v780_v50 }
  0x61   :  { %715 = vmatprep.subr.bf16.mxu0 %v781_v51 }
  0x64   :  { %716 = vmatpush3.bf16.msra.mxu0 %v782_v52 }
  0x67   :  { %585 = vmatmul.mubr.bf16.vlgmr.msra.gmra.mrb[4].mxu0 %v783_v53 }
 0x11a   :  { %v673_v54 = vpop.f32.mrb[0].mxu0 }
 0x11b   :  { %v674_v56 = vpop.f32.mrb[1].mxu0 }
 0x11c   :  { %v675_v57 = vadd.f32 %v674_v56, %v673_v54  ;;  %v676_v58 = vpop.f32.mrb[2].mxu0  ;;  %v695_v59 = vpop.f32.mrb[0].mxu1 }
 0x11d   :  { %v677_v60 = vpop.f32.mrb[3].mxu0  ;;  %v696_v63 = vpop.f32.mrb[1].mxu1 }
 0x11e   :  { %v505_v61 = vadd.f32 %v675_v57, %v602_v55  ;;  %v678_v62 = vadd.f32 %v677_v60, %v676_v58  ;;  %v697_v0 = vadd.f32 %v696_v63, %v695_v59  ;;  %v698_v1 = vpop.f32.mrb[2].mxu1 }
 0x11f   :  { %v699_v3 = vpop.f32.mrb[3].mxu1 }
 0x120   :  { %v508_v2 = vadd.f32 %v678_v62, %v602_v55  ;;  %v546_v4 = vadd.f32 %v697_v0, %v505_v61  ;;  %v700_v5 = vadd.f32 %v699_v3, %v698_v1 }
 0x122   :  { %v549_v6 = vadd.f32 %v700_v5, %v508_v2 }
 0x13a   :  { %v717_v7 = vpop.f32.mrb[4].mxu0 }
 0x13b   :  { %v718_v8 = vpop.f32.mrb[5].mxu0 }
 0x13c   :  { %v719_v9 = vadd.f32 %v718_v8, %v717_v7  ;;  %v720_v10 = vpop.f32.mrb[6].mxu0 }
 0x13d   :  { %v721_v11 = vpop.f32.mrb[7].mxu0 }
 0x13e   :  { %v587_v12 = vadd.f32 %v719_v9, %v546_v4  ;;  %v722_v13 = vadd.f32 %v721_v11, %v720_v10 }
 0x140   :  { %594 = vst.msk [vmem:[%s896_s3] sm:$0xff] %vm593_vm0, %v587_v12  ;;  %v590_v14 = vadd.f32 %v722_v13, %v549_v6 }
 0x142   :  { %595 = vst.msk [vmem:[%s896_s3 + $0x8] sm:$0xff] %vm593_vm0, %v590_v14 }
 0x143   :  { %600 = vsyncpa [#allocation3], 1 }
 0x144   :  { %601 = vsyncpa [#allocation5], 1 }

</bundles_post_ra>
